<compile_context>
chip_gen: v6e
topology: v6e:2x2x1
jax: 0.10.0
libtpu: 0.0.40
codegen_flags: <defaults>
</compile_context>

<pallas_src>
import jax
import jax.numpy as jnp
from jax.experimental import pallas as pl
from jax.experimental.pallas import tpu as pltpu


def _sam_kernel_fused(x_ref, ximg_ref, wcat_ref, bcat_ref, x1_ref, img_ref):
    # x_ref:    (C, thw)      activations (channels on sublanes, pixels on lanes)
    # ximg_ref: (3, thw)
    # wcat_ref: (C+3, C)      [w1 + I ; w2]
    # bcat_ref: (C+3, 1)      [b1 ; b2]
    # x1_ref:   (C, thw)
    # img_ref:  (3, thw)
    x = x_ref[...]
    y = jnp.dot(wcat_ref[...], x, preferred_element_type=jnp.float32)
    y = y + bcat_ref[...]
    C = x1_ref.shape[0]
    x1_ref[...] = y[:C, :].astype(x1_ref.dtype)                       # conv1(x)+x (I folded)
    img_ref[...] = (y[C:, :] + ximg_ref[...].astype(jnp.float32)
                    ).astype(img_ref.dtype)                           # conv2(x)+x_img


def _sam_kernel_split(x_ref, ximg_ref, w1_ref, b1_ref, w2_ref, b2_ref,
                      x1_ref, img_ref):
    # Fallback when C % 8 != 0 (row slicing of a fused result would cross a
    # sublane tile).  w1 already has the identity folded in.
    x = x_ref[...]
    y1 = jnp.dot(w1_ref[...], x, preferred_element_type=jnp.float32) + b1_ref[...]
    x1_ref[...] = y1.astype(x1_ref.dtype)
    y2 = jnp.dot(w2_ref[...], x, preferred_element_type=jnp.float32) + b2_ref[...]
    img_ref[...] = (y2 + ximg_ref[...].astype(jnp.float32)).astype(img_ref.dtype)


def _pick_thw(HW, cap, min_lane_tiles):
    """Largest lane tile <= cap that divides HW and is a multiple of 128 (or the
    full HW).  Prefers a tile giving >= min_lane_tiles grid steps.  Returns None
    if only the padding fallback is possible."""
    cap_eff = min(cap, HW)
    best_any = None
    t = (cap_eff // 128) * 128
    while t >= 128:
        if HW % t == 0:
            if best_any is None:
                best_any = t
            if HW // t >= min_lane_tiles:
                return t
        t -= 128
    if best_any is not None:
        return best_any
    return HW if HW <= cap else None


def sam_pallas(x, x_img, w1, b1, w2, b2, *, thw_cap=8192):
    """SAM forward with kernel_size=1 convs.

    x:     (N, C, H, W)    n_feat = C
    x_img: (N, 3, H, W)
    w1:    (C, C, 1, 1)    conv1 weight (PyTorch layout)
    b1:    (C,) or None
    w2:    (3, C, 1, 1)    conv2 weight
    b2:    (3,) or None
    returns (x1, img) with shapes (N, C, H, W), (N, 3, H, W)
    """
    N, C, H, W = x.shape
    assert x_img.shape == (N, 3, H, W)
    HW = H * W

    # Free reshapes (no transpose, no extra HBM pass).
    x3 = x.reshape(N, C, HW)
    ximg3 = x_img.reshape(N, 3, HW)

    # Weight prep (one-time, wrapper side): fold the x residual into conv1.
    w1m = w1.reshape(C, C).astype(jnp.float32) + jnp.eye(C, dtype=jnp.float32)
    w2m = w2.reshape(3, C).astype(jnp.float32)
    b1c = (jnp.zeros((C,), jnp.float32) if b1 is None else b1.astype(jnp.float32)).reshape(C, 1)
    b2c = (jnp.zeros((3,), jnp.float32) if b2 is None else b2.astype(jnp.float32)).reshape(3, 1)

    # Lane-tile selection: avoid the pad/slice fallback whenever possible and
    # keep >= 2 grid steps available for megacore when N == 1.
    min_lane_tiles = 2 if N == 1 else 1
    thw = _pick_thw(HW, thw_cap, min_lane_tiles)
    if thw is None:
        # Last-resort pad path (extra HBM pass); only hit for odd spatial sizes
        # with HW > thw_cap and no 128-multiple divisor.
        thw = max(128, (min(thw_cap, HW) // 128) * 128)
        HW_pad = pl.cdiv(HW, thw) * thw
        pad = HW_pad - HW
        x3 = jnp.pad(x3, ((0, 0), (0, 0), (0, pad)))
        ximg3 = jnp.pad(ximg3, ((0, 0), (0, 0), (0, pad)))
    else:
        HW_pad = HW

    grid = (N, HW_pad // thw)

    # VMEM budget computed from the actual tiles (double-buffered in + out),
    # capped well below v7x's 64 MiB physical VMEM.
    itemsize = max(jnp.dtype(x.dtype).itemsize, 2)
    act_bytes = 2 * 2 * (C + 3) * thw * itemsize
    w_bytes = 4 * ((C + 3) * C + (C + 3))
    vmem_limit = int(min(max(act_bytes + w_bytes + (8 << 20), 16 << 20), 48 << 20))

    act_in_specs = [
        pl.BlockSpec((pl.Squeezed(), C, thw), lambda n, j: (n, 0, j)),
        pl.BlockSpec((pl.Squeezed(), 3, thw), lambda n, j: (n, 0, j)),
    ]
    out_specs = [
        pl.BlockSpec((pl.Squeezed(), C, thw), lambda n, j: (n, 0, j)),
        pl.BlockSpec((pl.Squeezed(), 3, thw), lambda n, j: (n, 0, j)),
    ]

    if C % 8 == 0:
        # Single fused (C+3, C) matmul; result rows slice on sublane boundaries.
        wcat = jnp.concatenate([w1m, w2m], axis=0)          # (C+3, C)
        bcat = jnp.concatenate([b1c, b2c], axis=0)          # (C+3, 1)
        kernel = _sam_kernel_fused
        weight_args = (wcat, bcat)
        weight_specs = [
            pl.BlockSpec((C + 3, C), lambda n, j: (0, 0)),
            pl.BlockSpec((C + 3, 1), lambda n, j: (0, 0)),
        ]
    else:
        kernel = _sam_kernel_split
        weight_args = (w1m, b1c, w2m, b2c)
        weight_specs = [
            pl.BlockSpec((C, C), lambda n, j: (0, 0)),
            pl.BlockSpec((C, 1), lambda n, j: (0, 0)),
            pl.BlockSpec((3, C), lambda n, j: (0, 0)),
            pl.BlockSpec((3, 1), lambda n, j: (0, 0)),
        ]

    x1_flat, img_flat = pl.pallas_call(
        kernel,
        out_shape=(
            jax.ShapeDtypeStruct((N, C, HW_pad), x.dtype),
            jax.ShapeDtypeStruct((N, 3, HW_pad), x.dtype),
        ),
        grid_spec=pltpu.PrefetchScalarGridSpec(
            num_scalar_prefetch=0,
            grid=grid,
            in_specs=act_in_specs + weight_specs,
            out_specs=out_specs,
        ),
        compiler_params=pltpu.CompilerParams(
            dimension_semantics=("parallel", "parallel"),
            vmem_limit_bytes=vmem_limit,
        ),
    )(x3, ximg3, *weight_args)

    if HW_pad != HW:
        x1_flat = x1_flat[:, :, :HW]
        img_flat = img_flat[:, :, :HW]
    x1 = x1_flat.reshape(N, C, H, W)
    img = img_flat.reshape(N, 3, H, W)
    return x1, img


def sam_reference(x, x_img, w1, b1, w2, b2):
    # Pure-JAX reference of SAM.forward with 1x1 convs.
    C = x.shape[1]
    w1m = w1.reshape(C, C)
    w2m = w2.reshape(3, C)
    y1 = jnp.einsum("nchw,oc->nohw", x, w1m,
                    precision=jax.lax.Precision.HIGHEST)
    y2 = jnp.einsum("nchw,oc->nohw", x, w2m,
                    precision=jax.lax.Precision.HIGHEST)
    if b1 is not None:
        y1 = y1 + b1[None, :, None, None]
    if b2 is not None:
        y2 = y2 + b2[None, :, None, None]
    return y1 + x, y2 + x_img


if __name__ == "__main__":
    key = jax.random.PRNGKey(0)
    k_x, k_img, k_w1, k_b1, k_w2, k_b2 = jax.random.split(key, 6)

    # SAM(n_feat=8, kernel_size=1, bias=True); input (2, 8, 16, 16).
    N, n_feat, H, W = 2, 8, 16, 16

    x = jax.random.normal(k_x, (N, n_feat, H, W), dtype=jnp.float32)
    x_img = jax.random.normal(k_img, (N, 3, H, W), dtype=jnp.float32)
    w1 = jax.random.normal(k_w1, (n_feat, n_feat, 1, 1), dtype=jnp.float32) * 0.1
    b1 = jax.random.normal(k_b1, (n_feat,), dtype=jnp.float32) * 0.1
    w2 = jax.random.normal(k_w2, (3, n_feat, 1, 1), dtype=jnp.float32) * 0.1
    b2 = jax.random.normal(k_b2, (3,), dtype=jnp.float32) * 0.1

    x1, img = sam_pallas(x, x_img, w1, b1, w2, b2)
    x1 = jax.block_until_ready(x1)
    img = jax.block_until_ready(img)

    x1_ref, img_ref = sam_reference(x, x_img, w1, b1, w2, b2)
    assert x1.shape == (N, n_feat, H, W)
    assert img.shape == (N, 3, H, W)
    assert jnp.allclose(x1, x1_ref, atol=1e-5, rtol=1e-4), float(
        jnp.max(jnp.abs(x1 - x1_ref)))
    assert jnp.allclose(img, img_ref, atol=1e-5, rtol=1e-4), float(
        jnp.max(jnp.abs(img - img_ref)))

    print("KERNEL_OK")
</pallas_src>

<mosaic_0001>
module attributes {stable_mosaic.version = 11 : i64} {
  func.func @_sam_kernel_fused(%arg0: i32, %arg1: i32, %arg2: memref<1x8x256xf32, #tpu.memory_space<vmem>>, %arg3: memref<1x3x256xf32, #tpu.memory_space<vmem>>, %arg4: memref<11x8xf32, #tpu.memory_space<vmem>>, %arg5: memref<11x1xf32, #tpu.memory_space<vmem>>, %arg6: memref<1x8x256xf32, #tpu.memory_space<vmem>>, %arg7: memref<1x3x256xf32, #tpu.memory_space<vmem>>) attributes {dimension_semantics = [#tpu.dimension_semantics<parallel>, #tpu.dimension_semantics<parallel>], iteration_bounds = array<i64: 2, 1>, scalar_prefetch = 0 : i64, scratch_operands = 0 : i64, tpu.core_type = #tpu.core_type<tc>, window_params = [{transform_indices = @transform_0, window_bounds = array<i64: 1, 8, 256>}, {transform_indices = @transform_1, window_bounds = array<i64: 1, 3, 256>}, {pipeline_mode = #tpu.pipeline_mode<synchronous>, transform_indices = @transform_2, window_bounds = array<i64: 11, 8>}, {pipeline_mode = #tpu.pipeline_mode<synchronous>, transform_indices = @transform_3, window_bounds = array<i64: 11, 1>}, {transform_indices = @transform_4, window_bounds = array<i64: 1, 8, 256>}, {transform_indices = @transform_5, window_bounds = array<i64: 1, 3, 256>}]} {
    %c0 = arith.constant 0 : index
    %c0_0 = arith.constant 0 : index
    %c0_1 = arith.constant 0 : index
    %0 = vector.load %arg2[%c0, %c0_0, %c0_1] : memref<1x8x256xf32, #tpu.memory_space<vmem>>, vector<1x8x256xf32>
    %1 = vector.shape_cast %0 : vector<1x8x256xf32> to vector<8x256xf32>
    %c0_2 = arith.constant 0 : index
    %c0_3 = arith.constant 0 : index
    %2 = vector.load %arg4[%c0_2, %c0_3] : memref<11x8xf32, #tpu.memory_space<vmem>>, vector<11x8xf32>
    %cst = arith.constant dense<0.000000e+00> : vector<11x256xf32>
    %3 = tpu.matmul %2, %1, %cst {dimension_numbers = #tpu.dot_dimension_numbers<[1], [0], [0], [1], [0, 0, 1, 1], [], []>} : vector<11x8xf32>, vector<8x256xf32>, vector<11x256xf32> -> vector<11x256xf32>
    %c0_4 = arith.constant 0 : index
    %c0_5 = arith.constant 0 : index
    %4 = vector.load %arg5[%c0_4, %c0_5] : memref<11x1xf32, #tpu.memory_space<vmem>>, vector<11x1xf32>
    %5 = vector.broadcast %4 : vector<11x1xf32> to vector<11x256xf32>
    %6 = arith.addf %3, %5 : vector<11x256xf32>
    %7 = vector.extract_strided_slice %6 {offsets = [0, 0], sizes = [8, 256], strides = [1, 1]} : vector<11x256xf32> to vector<8x256xf32>
    %c0_6 = arith.constant 0 : index
    %c0_7 = arith.constant 0 : index
    %c0_8 = arith.constant 0 : index
    %8 = vector.load %arg6[%c0_6, %c0_7, %c0_8] : memref<1x8x256xf32, #tpu.memory_space<vmem>>, vector<1x8x256xf32>
    %9 = vector.shape_cast %8 : vector<1x8x256xf32> to vector<8x256xf32>
    %10 = vector.shape_cast %7 : vector<8x256xf32> to vector<1x8x256xf32>
    tpu.vector_store %arg6[%c0_6, %c0_7, %c0_8], %10 {strides = array<i32>} : memref<1x8x256xf32, #tpu.memory_space<vmem>>, vector<1x8x256xf32>,
    %11 = vector.extract_strided_slice %6 {offsets = [8, 0], sizes = [3, 256], strides = [1, 1]} : vector<11x256xf32> to vector<3x256xf32>
    %c0_9 = arith.constant 0 : index
    %c0_10 = arith.constant 0 : index
    %c0_11 = arith.constant 0 : index
    %12 = vector.load %arg3[%c0_9, %c0_10, %c0_11] : memref<1x3x256xf32, #tpu.memory_space<vmem>>, vector<1x3x256xf32>
    %13 = vector.shape_cast %12 : vector<1x3x256xf32> to vector<3x256xf32>
    %14 = arith.addf %11, %13 : vector<3x256xf32>
    %c0_12 = arith.constant 0 : index
    %c0_13 = arith.constant 0 : index
    %c0_14 = arith.constant 0 : index
    %15 = vector.load %arg7[%c0_12, %c0_13, %c0_14] : memref<1x3x256xf32, #tpu.memory_space<vmem>>, vector<1x3x256xf32>
    %16 = vector.shape_cast %15 : vector<1x3x256xf32> to vector<3x256xf32>
    %17 = vector.shape_cast %14 : vector<3x256xf32> to vector<1x3x256xf32>
    tpu.vector_store %arg7[%c0_12, %c0_13, %c0_14], %17 {strides = array<i32>} : memref<1x3x256xf32, #tpu.memory_space<vmem>>, vector<1x3x256xf32>,
    return
  }
  func.func @transform_0(%arg0: i32, %arg1: i32) -> (i32, i32, i32) {
    %c0_i32 = arith.constant 0 : i32
    %c0_i32_0 = arith.constant 0 : i32
    return %arg0, %c0_i32, %arg1 : i32, i32, i32
  }
  func.func @transform_1(%arg0: i32, %arg1: i32) -> (i32, i32, i32) {
    %c0_i32 = arith.constant 0 : i32
    %c0_i32_0 = arith.constant 0 : i32
    return %arg0, %c0_i32, %arg1 : i32, i32, i32
  }
  func.func @transform_2(%arg0: i32, %arg1: i32) -> (i32, i32) {
    %c0_i32 = arith.constant 0 : i32
    %c0_i32_0 = arith.constant 0 : i32
    %c0_i32_1 = arith.constant 0 : i32
    return %c0_i32, %c0_i32_0 : i32, i32
  }
  func.func @transform_3(%arg0: i32, %arg1: i32) -> (i32, i32) {
    %c0_i32 = arith.constant 0 : i32
    %c0_i32_0 = arith.constant 0 : i32
    %c0_i32_1 = arith.constant 0 : i32
    return %c0_i32, %c0_i32_0 : i32, i32
  }
  func.func @transform_4(%arg0: i32, %arg1: i32) -> (i32, i32, i32) {
    %c0_i32 = arith.constant 0 : i32
    %c0_i32_0 = arith.constant 0 : i32
    return %arg0, %c0_i32, %arg1 : i32, i32, i32
  }
  func.func @transform_5(%arg0: i32, %arg1: i32) -> (i32, i32, i32) {
    %c0_i32 = arith.constant 0 : i32
    %c0_i32_0 = arith.constant 0 : i32
    return %arg0, %c0_i32, %arg1 : i32, i32, i32
  }
}

</mosaic_0001>

<bundles_post_ra>
// kernel: tpu_custom_call.1
= control target key start
LH: loop header
LB: loop body
LE: loop exit
PB: predicated region body
PF: predicated region fallthrough
CT: control target
= control target key end

     0   :  { %11 = vsyncpa [#allocation3], 0  ;;  %s919_s0 = inlined_call_operand.vmem [shape: f32[2,8,256], index: 0, kind: input, shape index: {}]   ;;  %s920_s1 = inlined_call_operand.vmem [shape: f32[2,3,256], index: 1, kind: input, shape index: {}]   ;;  %s921_s2 = inlined_call_operand.vmem [shape: f32[11,8], index: 2, kind: input, shape index: {}]   ;;  %s922_s3 = inlined_call_operand.vmem [shape: f32[11,1], index: 3, kind: input, shape index: {}]   ;;  %s923_s4 = inlined_call_operand.hbm [shape: f32[2,8,256], index: 4, kind: output, shape index: {0}]   ;;  %s924_s5 = inlined_call_operand.vmem [shape: f32[2,3,256], index: 5, kind: output, shape index: {1}]  }
   0x1   :  { %13 = vsyncpa [#allocation3 + $0x1], 0  ;;  %s783_s18 = smov 0   ;;  %s785_s19 = smov 0  }
   0x2   :  { %s787_s20 = smov 0   ;;  %s789_s21 = smov 0  }
   0x3   :  { %s791_s22 = smov 0   ;;  %s793_s23 = smov 0  }
   0x4 LB: > { %s588_s24 = sadd.s32 4294967295, %s748_s23   ;;  %s589_s25 = sadd.s32 4294967294, %s748_s23   ;;  %s748_s23 = sphi %s793_s23, %s19_s23   ;;  %s744_s22 = sphi %s791_s22, %s931_s22   ;;  %s740_s21 = sphi %s789_s21, %s930_s21   ;;  %s736_s20 = sphi %s787_s20, %s929_s20   ;;  %s732_s19 = sphi %s785_s19, %s928_s19   ;;  %s728_s18 = sphi %s783_s18, %s927_s18  }
   0x5   : > { %s31_s26 = sadd.s32 1, %s744_s22  ;;  %s138_s27 = sadd.s32 1, %s736_s20 }
   0x6   : > { %p33_p0 = scmp.ge.s32.totalorder %s31_s26, 2  ;;  %p148_p1 = scmp.ne.s32.totalorder %s736_s20, %s732_s19 }
   0x7   : > { %p149_p2 = scmp.eq.s32.totalorder %s588_s24, 1  ;;  %p154_p3 = scmp.ne.s32.totalorder %s732_s19, %s728_s18 }
   0x8   : > { %s933_s26 = smov (%p33_p0, %s31_s26), 0  ;;  %p155_p5 = scmp.eq.s32.totalorder %s589_s25, 1 }
   0x9   : > { %p823_p4 = por %p149_p2, %p148_p1  ;;  %s133_s29 = ssub.s32 %s744_s22, %s933_s26 }
   0xa   : > { %p592_p6 = scmp.ge.s32.totalorder %s748_s23, 1  ;;  %p136_p7 = scmp.eq.s32.totalorder %s133_s29, 0 }
   0xb   : > { %p830_p8 = por %p155_p5, %p154_p3  ;;  %p233_p9 = scmp.lt.s32.totalorder %s748_s23, 3 }
   0xc   : > { %s836_s6 = scalar_select %p136_p7, %s736_s20, %s138_s27  }
   0xd   : > { %p234_p10 = pnand %p592_p6, %p233_p9 }
   0xe   : > { %p284_p11 = scmp.lt.s32.totalorder (!%p234_p10), %s740_s21, 1  ;;  %s269_s29 = sand.u32 (!%p234_p10), 1, %s732_s19  }
   0xf   : > { %237 = sbr.rel (%p234_p10) target bundleno = 239 (0xef), region = 36  ;;  %s593_s11 = sshll.u32 (!%p234_p10), %s269_s29, 4 }
  0x10   : > { %s610_s12 = sshll.u32 (!%p234_p10), %s740_s21, 8  ;;  %s428_s25 = scalar_lea.sflag (!%p234_p10), [#allocation3], %s269_s29 }
  0x11   : > { %s867_s16 = scalar_lea.hbm (!%p234_p10), %s923_s4, %s610_s12  ;;  %s752_s8 = smov (!%p234_p10), [#allocation2]  }
  0x14   : > { %v750_v0 = vmov 0.0   ;;  %v319_v1 = vld [vmem:[%s922_s3 + $0x8] sm:$0x7]  ;;  %s843_s9 = scalar_select %p284_p11, %s740_s21, 1  ;;  %v751_v2 = vmov 0   ;;  %v316_v3 = vld [vmem:[%s921_s2] sm:$0xff] }
  0x15   : > { %401 = vmatprep.mubr.f32.mxu0 %v750_v0  ;;  %407 = vmatprep.mubr.f32.mxu1 %v750_v0  ;;  %vm330_vm0 = vcmask 64512   ;;  %v317_v6 = vld [vmem:[%s921_s2 + $0x8] sm:$0x7]  ;;  %v318_v7 = vld [vmem:[%s922_s3] sm:$0xff] }
  0x16   : > { %670 = vset.pattern.permute.xlu0 %v751_v2  ;;  %s607_s10 = sshll.u32 %s843_s9, 4  ;;  %s608_s27 = sshll.u32 %s843_s9, 3 }
  0x17   : > { %327 = vperm.xlu0 %670, %v319_v1   ;;  %s291_s13 = scalar_lea.vmem %s919_s0, %s607_s10  ;;  %s301_s10 = scalar_lea.vmem %s920_s1, %s608_s27 }
  0x18   : > { %v315_v4 = vld [vmem:[%s291_s13 + $0x8] sm:$0xff]  ;;  %v314_v5 = vld [vmem:[%s291_s13] sm:$0xff]  ;;  %s271_s13 = scalar_lea.vmem [#allocation2], %s593_s11  ;;  %s874_s24 = scalar_lea.vmem %s924_s5, %s608_s27 }
  0x19   : > { %367 = vmatprep.subr.mxu0 %v315_v4  ;;  %611 = vmatprep.subr.mxu1 %v315_v4  ;;  %v416_v9 = vld [vmem:[%s301_s10] sm:$0x77]  ;;  %s453_s14 = sshll.u32 %s271_s13, 4  ;;  %s676_s10 = sshll.u32 %s752_s8, 4  ;;  %s869_s14 = int_to_ptr.vmem [resolvable:$true] %s453_s14  ;;  %s677_s10 = int_to_ptr.vmem [resolvable:$false] %s676_s10 }
  0x1a   : > { %368 = vmatpush1.msra.mxu0 %v314_v5  ;;  %612 = vmatpush1.msra.mxu1 %v314_v5  ;;  %v418_v15 = vcombine.high %v416_v9, %v416_v9  ;;  %s672_s7 = scalar_lea.vmem %s869_s14, 256  ;;  %s678_s11 = scalar_lea.vmem %s677_s10, 512 }
  0x1b   : > { %600 = vmatmul.mubr.msk.f32.vlgmr.msra.gmra.mxu0 %vm330_vm0, %v316_v3  ;;  %601 = vmatmul.mubr.msk.f32.vlgmr.msra.gmra.mxu1 %vm330_vm0, %v317_v6  ;;  %p673_p12 = scmp.ne.s32.totalorder %s869_s14, %s672_s7  ;;  %p679_p1 = scmp.lt.s32.totalorder %s869_s14, %s677_s10 }
  0x1c   : > { %322 = vperm.xlu0 %670, %v318_v7   ;;  %p680_p2 = scmp.lt.s32.totalorder %s678_s11, %s672_s7 }
  0x1d   : > { %p674_p13 = pnand %p673_p12, %p823_p4 }
  0x1e   : > { %p681_p3 = por %p680_p2, %p679_p1 }
  0x1f   : > { %p675_p0 = pneg %p674_p13 }
  0x21   : > { %p682_p5 = pnand %p681_p3, %p675_p0 }
  0x92   : > { %v328_v8 = vpop.permute.xlu0 %327 }
  0x97   : > { %v323_v10 = vpop.permute.xlu0 %322 }
  0xdb   : > { %v403_v11 = vpop.f32.mrf.mxu0  ;;  %v409_v12 = vpop.f32.mrf.mxu1 }
  0xdc   : > { %v410_v13 = vadd.f32 %v409_v12, %v328_v8  ;;  %v404_v14 = vadd.f32 %v403_v11, %v323_v10 }
  0xdd   : > { %v405_v16 = vpop.f32.mrf.mxu0  ;;  %v411_v17 = vpop.f32.mrf.mxu1 }
  0xde   : > { %414 = vst [vmem:[%s271_s13] sm:$0xff] %v404_v14  ;;  %v406_v18 = vadd.f32 %v405_v16, %v323_v10  ;;  %v412_v19 = vadd.f32 %v411_v17, %v328_v8  ;;  %v420_v20 = vadd.f32 %v416_v9, %v410_v13 }
  0xe0   : > { %415 = vst [vmem:[%s271_s13 + $0x8] sm:$0xff] %v406_v18  ;;  %v421_v21 = vadd.f32 %v418_v15, %v412_v19 }
  0xe1   : > { %685 = shalt.err (!%p682_p5)
}
  0xe2   : > { %s686_s27 = scalar_lea.hbm %s867_s16, 256  ;;  %s690_s13 = scalar_lea.hbm %s923_s4, 512 }
  0xe3   : > { %p687_p6 = scmp.ne.s32.totalorder %s867_s16, %s686_s27  ;;  %p691_p10 = scmp.lt.s32.totalorder %s867_s16, %s923_s4 }
  0xe4   : > { %p692_p11 = scmp.lt.s32.totalorder %s690_s13, %s686_s27 }
  0xe5   : > { %p688_p7 = pnand %p687_p6, %p823_p4 }
  0xe6   : > { %p693_p12 = por %p692_p11, %p691_p10 }
  0xe7   : > { %p689_p9 = pneg %p688_p7 }
  0xe9   : > { %p694_p13 = pnand %p693_p12, %p689_p9 }
  0xeb   : > { %697 = shalt.err (!%p694_p13)
}
  0xec   : > { %613 = dma.vmem_to_hbm [thread:$0]  (%p823_p4), %s869_s14, 256, %s867_s16, %s428_s25   ;;  %v424_v22 = vcombine.low %v420_v20, %v421_v21 }
  0xee   : > { %426 = vst [vmem:[%s874_s24] sm:$0x77] %v424_v22 }
  0xef PF: > { %p619_p0 = scmp.ge.s32.totalorder %s748_s23, 2  ;;  %s469_s17 = sand.u32 1, %s728_s18  }
  0xf0   : > { %s470_s21 = scalar_lea.sflag [#allocation3], %s469_s17 }
  0xf1   : > { %p616_p1 = pnand %p619_p0, %p830_p8 }
  0xf3   : > { %p617_p2 = pneg %p616_p1 }
  0xf5   : > { %723 = dma.done.wait (%p617_p2), %s470_s21, 256  }
  0xf6   : > { %725 = vsyncadd (%p617_p2), %s470_s21, 4294967040  ;;  %s19_s23 = sadd.s32 1, %s748_s23   ;;  %s927_s18 = smov %s732_s19 }
  0xf7   : > { %p16_p3 = scmp.ge.s32.totalorder %s19_s23, 4   ;;  %s928_s19 = smov %s736_s20 }
  0xf8   : > { %s929_s20 = smov %s836_s6  ;;  %s930_s21 = smov %s744_s22 }
  0xf9   : > { %s931_s22 = smov %s933_s26  ;;  %18 = sbr.rel (!%p16_p3) target bundleno = 4 (0x4), region = 86 }
  0xfe   :  { %487 = vsyncpa [#allocation3], 1 }
  0xff   :  { %489 = vsyncpa [#allocation3 + $0x1], 1 }

</bundles_post_ra>
